<compile_context>
chip_gen: v7x
topology: tpu7x:2x2x1
jax: 0.10.0
libtpu: 0.0.40
codegen_flags: <defaults>
</compile_context>

<pallas_src>
import jax
import jax.numpy as jnp
from jax.experimental import pallas as pl
from jax.experimental.pallas import tpu as pltpu


def _graph_pool_kernel(h_ref, w_ref, b_ref, out_ref):
    """One batch element per grid step.

    h_ref:   (n_nodes, in_dim)  VMEM  graph features (batch dim squeezed)
    w_ref:   (1, in_dim)        VMEM  projection weight as a lane-dense row
    b_ref:   (1,)               SMEM  projection bias (scalar path)
    out_ref: (n_keep, in_dim)   VMEM  kept rows in descending-score order
    """
    n_nodes, _ = h_ref.shape
    n_keep = out_ref.shape[0]

    h = h_ref[...].astype(jnp.float32)                       # (N, D)
    w = w_ref[...].astype(jnp.float32)                       # (1, D)

    # D -> 1 projection on VPU (mul) + XLU (cross-lane reduce); MXU stays idle
    # by design (a 1-column contraction would waste it).
    scores = jax.nn.sigmoid(
        jnp.sum(h * w, axis=-1, keepdims=True) + b_ref[0])   # (N, 1) f32

    node_ids = jax.lax.broadcasted_iota(jnp.int32, (n_nodes, 1), 0)

    # Fused top-k + gather + score weighting: h never leaves VMEM.
    def select_one(j, masked):
        m = jnp.max(masked, axis=0, keepdims=True)           # (1, 1) best score
        # First index attaining the max (ties -> lowest index, like lax.top_k).
        idx = jnp.min(jnp.where(masked == m, node_ids, n_nodes),
                      axis=0, keepdims=True)                 # (1, 1)
        onehot = (node_ids == idx).astype(jnp.float32)       # (N, 1)
        # One-hot masked cross-sublane reduce == gather of row `idx`; keeps the
        # whole selection vector-only (no scalar extraction from a vreg).
        row = jnp.sum(h * onehot, axis=0, keepdims=True)     # (1, D)
        out_ref[pl.ds(j, 1), :] = (row * m).astype(out_ref.dtype)
        # Remove the selected node from contention for the next iteration.
        return jnp.where(onehot > 0.0, -jnp.inf, masked)

    # n_keep is small and static -> fully unrolled so the scheduler sees it.
    jax.lax.fori_loop(0, n_keep, select_one, scores, unroll=True)


def graph_pool(h, w, b, k):
    """GraphPool forward (eval mode).

    h: (bs, n_nodes, in_dim); w: (in_dim, 1) (torch Linear weight, stored
    transposed); b: (1,) bias; k: keep ratio.
    Returns (bs, max(int(n_nodes * k), 1), in_dim).
    """
    bs, n_nodes, in_dim = h.shape
    n_keep = max(int(n_nodes * k), 1)

    w_row = w.reshape(1, in_dim)                   # lane-dense weight row
    b_flat = b.reshape(1).astype(jnp.float32)

    itemsize = jnp.dtype(h.dtype).itemsize
    cost = pl.CostEstimate(
        flops=2 * bs * n_nodes * in_dim                      # projection
              + 2 * bs * n_keep * n_nodes * in_dim,          # one-hot gathers
        transcendentals=bs * n_nodes,                        # sigmoid
        bytes_accessed=(bs * n_nodes * in_dim + bs * n_keep * in_dim) * itemsize
                       + in_dim * 4 + 4,
    )

    # Grid over batch; each step owns one (n_nodes, in_dim) tile.  Block shapes
    # equal the full trailing array dims, so the (8,128) constraint is
    # satisfied.  dimension_semantics=("parallel",) lets v7x shard batches
    # across its 2 TensorCores (no-op on v5e/v6e, safe to set unconditionally).
    # NOTE: at this toy (2,16,32) size any custom call is launch/DMA bound; the
    # fusion at least guarantees a single HBM read of h and no extra XLA
    # top_k/gather launches.  A shape-gated pure-XLA fallback is reasonable for
    # tiny graphs.
    # TODO(synk): for production graph sizes, tile n_nodes (sublane multiples
    # of 8, block bytes sized against v7x's 64 MiB physical / 32 MiB scoped
    # VMEM), replace the O(n_keep*N*D) one-hot gather with dynamic-index VMEM
    # row reads, and merge per-tile partial maxima for the selection.
    return pl.pallas_call(
        _graph_pool_kernel,
        out_shape=jax.ShapeDtypeStruct((bs, n_keep, in_dim), h.dtype),
        grid=(bs,),
        in_specs=[
            pl.BlockSpec((None, n_nodes, in_dim), lambda bi: (bi, 0, 0)),  # h
            pl.BlockSpec((1, in_dim), lambda bi: (0, 0)),                  # w
            pl.BlockSpec(memory_space=pltpu.MemorySpace.SMEM),             # b
        ],
        out_specs=pl.BlockSpec((None, n_keep, in_dim), lambda bi: (bi, 0, 0)),
        compiler_params=pltpu.CompilerParams(
            dimension_semantics=("parallel",)),
        cost_estimate=cost,
    )(h, w_row, b_flat)


if __name__ == "__main__":
    # Module hyper-params: GraphPool(k=0.5, in_dim=32, p=0.3) in eval mode.
    k_ratio = 0.5
    in_dim = 32
    bs, n_nodes = 2, 16

    key = jax.random.PRNGKey(0)
    kh, kw, kb = jax.random.split(key, 3)

    h = jax.random.normal(kh, (bs, n_nodes, in_dim), dtype=jnp.float32)
    # nn.Linear(in_dim, 1): weight (1, in_dim), bias (1,).  Stored transposed.
    bound = 1.0 / (in_dim ** 0.5)
    w = jax.random.uniform(kw, (in_dim, 1), minval=-bound, maxval=bound,
                           dtype=jnp.float32)
    b = jax.random.uniform(kb, (1,), minval=-bound, maxval=bound,
                           dtype=jnp.float32)

    out = graph_pool(h, w, b, k_ratio)
    out = jax.block_until_ready(out)

    # Plain-JAX reference with the PyTorch forward's semantics (eval-mode
    # dropout; same mul+reduce op order as the kernel, exact f32).
    n_keep = max(int(n_nodes * k_ratio), 1)
    scores_ref = jax.nn.sigmoid(
        jnp.sum(h * w.reshape(1, 1, in_dim), axis=-1, keepdims=True) + b[0])
    weighted_ref = h * scores_ref
    _, idx_ref = jax.lax.top_k(scores_ref[..., 0], n_keep)
    ref = jnp.take_along_axis(weighted_ref, idx_ref[:, :, None], axis=1)

    assert out.shape == (bs, n_keep, in_dim), out.shape
    assert jnp.allclose(out, ref, atol=1e-5, rtol=1e-5), \
        float(jnp.max(jnp.abs(out - ref)))
    print("KERNEL_OK")
</pallas_src>

<mosaic_0001>
module attributes {stable_mosaic.version = 11 : i64} {
  func.func @_graph_pool_kernel(%arg0: i32, %arg1: memref<1x16x32xf32, #tpu.memory_space<vmem>>, %arg2: memref<1x32xf32, #tpu.memory_space<vmem>>, %arg3: memref<1xf32, #tpu.memory_space<smem>>, %arg4: memref<1x8x32xf32, #tpu.memory_space<vmem>>) attributes {dimension_semantics = [#tpu.dimension_semantics<parallel>], iteration_bounds = array<i64: 2>, scalar_prefetch = 0 : i64, scratch_operands = 0 : i64, tpu.core_type = #tpu.core_type<tc>, window_params = [{transform_indices = @transform_0, window_bounds = array<i64: 1, 16, 32>}, {pipeline_mode = #tpu.pipeline_mode<synchronous>, transform_indices = @transform_1, window_bounds = array<i64: 1, 32>}, {transform_indices = @transform_2, window_bounds = array<i64: 1>}, {transform_indices = @transform_3, window_bounds = array<i64: 1, 8, 32>}]} {
    %c0 = arith.constant 0 : index
    %c0_0 = arith.constant 0 : index
    %c0_1 = arith.constant 0 : index
    %0 = vector.load %arg1[%c0, %c0_0, %c0_1] : memref<1x16x32xf32, #tpu.memory_space<vmem>>, vector<1x16x32xf32>
    %1 = vector.shape_cast %0 : vector<1x16x32xf32> to vector<16x32xf32>
    %c0_2 = arith.constant 0 : index
    %c0_3 = arith.constant 0 : index
    %2 = vector.load %arg2[%c0_2, %c0_3] : memref<1x32xf32, #tpu.memory_space<vmem>>, vector<1x32xf32>
    %3 = vector.broadcast %2 : vector<1x32xf32> to vector<16x32xf32>
    %4 = arith.mulf %1, %3 : vector<16x32xf32>
    %cst = arith.constant dense<0.000000e+00> : vector<16xf32>
    %5 = vector.multi_reduction <add>, %4, %cst [1] : vector<16x32xf32> to vector<16xf32>
    %6 = vector.shape_cast %5 : vector<16xf32> to vector<16x1xf32>
    %c0_4 = arith.constant 0 : index
    %7 = memref.load %arg3[%c0_4] : memref<1xf32, #tpu.memory_space<smem>>
    %8 = vector.broadcast %7 : f32 to vector<16x1xf32>
    %9 = arith.addf %6, %8 : vector<16x1xf32>
    %10 = arith.negf %9 : vector<16x1xf32>
    %11 = math.exp %10 : vector<16x1xf32>
    %cst_5 = arith.constant 1.000000e+00 : f32
    %12 = vector.broadcast %cst_5 : f32 to vector<16x1xf32>
    %13 = arith.addf %12, %11 : vector<16x1xf32>
    %14 = arith.divf %12, %13 : vector<16x1xf32>
    %15 = tpu.iota {dimensions = array<i32: 0>} : vector<16x1xi32>
    %c0_i32 = arith.constant 0 : i32
    %cst_6 = arith.constant dense<0xFF800000> : vector<1xf32>
    %16 = vector.multi_reduction <maximumf>, %14, %cst_6 [0] : vector<16x1xf32> to vector<1xf32>
    %17 = vector.shape_cast %16 : vector<1xf32> to vector<1x1xf32>
    %18 = vector.broadcast %17 : vector<1x1xf32> to vector<16x1xf32>
    %19 = arith.cmpf oeq, %14, %18 : vector<16x1xf32>
    %c16_i32 = arith.constant 16 : i32
    %20 = vector.broadcast %c16_i32 : i32 to vector<16x1xi32>
    %21 = arith.select %19, %15, %20 : vector<16x1xi1>, vector<16x1xi32>
    %cst_7 = arith.constant dense<2147483647> : vector<1xi32>
    %22 = vector.multi_reduction <minsi>, %21, %cst_7 [0] : vector<16x1xi32> to vector<1xi32>
    %23 = vector.shape_cast %22 : vector<1xi32> to vector<1x1xi32>
    %24 = vector.broadcast %23 : vector<1x1xi32> to vector<16x1xi32>
    %25 = arith.cmpi eq, %15, %24 : vector<16x1xi32>
    %26 = arith.extui %25 : vector<16x1xi1> to vector<16x1xi32>
    %27 = arith.sitofp %26 : vector<16x1xi32> to vector<16x1xf32>
    %28 = vector.broadcast %27 : vector<16x1xf32> to vector<16x32xf32>
    %29 = arith.mulf %1, %28 : vector<16x32xf32>
    %cst_8 = arith.constant dense<0.000000e+00> : vector<32xf32>
    %30 = vector.multi_reduction <add>, %29, %cst_8 [0] : vector<16x32xf32> to vector<32xf32>
    %31 = vector.shape_cast %30 : vector<32xf32> to vector<1x32xf32>
    %32 = vector.broadcast %17 : vector<1x1xf32> to vector<1x32xf32>
    %33 = arith.mulf %31, %32 : vector<1x32xf32>
    %c0_9 = arith.constant 0 : index
    %34 = arith.index_cast %c0_i32 : i32 to index
    %c0_10 = arith.constant 0 : index
    %35 = vector.load %arg4[%c0_9, %34, %c0_10] : memref<1x8x32xf32, #tpu.memory_space<vmem>>, vector<1x1x32xf32>
    %36 = vector.shape_cast %35 : vector<1x1x32xf32> to vector<1x32xf32>
    %37 = vector.shape_cast %33 : vector<1x32xf32> to vector<1x1x32xf32>
    tpu.vector_store %arg4[%c0_9, %34, %c0_10], %37 {strides = array<i32>} : memref<1x8x32xf32, #tpu.memory_space<vmem>>, vector<1x1x32xf32>,
    %cst_11 = arith.constant 0.000000e+00 : f32
    %38 = vector.broadcast %cst_11 : f32 to vector<16x1xf32>
    %39 = arith.cmpf ogt, %27, %38 : vector<16x1xf32>
    %cst_12 = arith.constant 0xFF800000 : f32
    %40 = vector.broadcast %cst_12 : f32 to vector<16x1xf32>
    %41 = arith.select %39, %40, %14 : vector<16x1xi1>, vector<16x1xf32>
    %c1_i32 = arith.constant 1 : i32
    %cst_13 = arith.constant dense<0xFF800000> : vector<1xf32>
    %42 = vector.multi_reduction <maximumf>, %41, %cst_13 [0] : vector<16x1xf32> to vector<1xf32>
    %43 = vector.shape_cast %42 : vector<1xf32> to vector<1x1xf32>
    %44 = vector.broadcast %43 : vector<1x1xf32> to vector<16x1xf32>
    %45 = arith.cmpf oeq, %41, %44 : vector<16x1xf32>
    %c16_i32_14 = arith.constant 16 : i32
    %46 = vector.broadcast %c16_i32_14 : i32 to vector<16x1xi32>
    %47 = arith.select %45, %15, %46 : vector<16x1xi1>, vector<16x1xi32>
    %cst_15 = arith.constant dense<2147483647> : vector<1xi32>
    %48 = vector.multi_reduction <minsi>, %47, %cst_15 [0] : vector<16x1xi32> to vector<1xi32>
    %49 = vector.shape_cast %48 : vector<1xi32> to vector<1x1xi32>
    %50 = vector.broadcast %49 : vector<1x1xi32> to vector<16x1xi32>
    %51 = arith.cmpi eq, %15, %50 : vector<16x1xi32>
    %52 = arith.extui %51 : vector<16x1xi1> to vector<16x1xi32>
    %53 = arith.sitofp %52 : vector<16x1xi32> to vector<16x1xf32>
    %54 = vector.broadcast %53 : vector<16x1xf32> to vector<16x32xf32>
    %55 = arith.mulf %1, %54 : vector<16x32xf32>
    %cst_16 = arith.constant dense<0.000000e+00> : vector<32xf32>
    %56 = vector.multi_reduction <add>, %55, %cst_16 [0] : vector<16x32xf32> to vector<32xf32>
    %57 = vector.shape_cast %56 : vector<32xf32> to vector<1x32xf32>
    %58 = vector.broadcast %43 : vector<1x1xf32> to vector<1x32xf32>
    %59 = arith.mulf %57, %58 : vector<1x32xf32>
    %c0_17 = arith.constant 0 : index
    %60 = arith.index_cast %c1_i32 : i32 to index
    %c0_18 = arith.constant 0 : index
    %61 = vector.load %arg4[%c0_17, %60, %c0_18] : memref<1x8x32xf32, #tpu.memory_space<vmem>>, vector<1x1x32xf32>
    %62 = vector.shape_cast %61 : vector<1x1x32xf32> to vector<1x32xf32>
    %63 = vector.shape_cast %59 : vector<1x32xf32> to vector<1x1x32xf32>
    tpu.vector_store %arg4[%c0_17, %60, %c0_18], %63 {strides = array<i32>} : memref<1x8x32xf32, #tpu.memory_space<vmem>>, vector<1x1x32xf32>,
    %cst_19 = arith.constant 0.000000e+00 : f32
    %64 = vector.broadcast %cst_19 : f32 to vector<16x1xf32>
    %65 = arith.cmpf ogt, %53, %64 : vector<16x1xf32>
    %cst_20 = arith.constant 0xFF800000 : f32
    %66 = vector.broadcast %cst_20 : f32 to vector<16x1xf32>
    %67 = arith.select %65, %66, %41 : vector<16x1xi1>, vector<16x1xf32>
    %c2_i32 = arith.constant 2 : i32
    %cst_21 = arith.constant dense<0xFF800000> : vector<1xf32>
    %68 = vector.multi_reduction <maximumf>, %67, %cst_21 [0] : vector<16x1xf32> to vector<1xf32>
    %69 = vector.shape_cast %68 : vector<1xf32> to vector<1x1xf32>
    %70 = vector.broadcast %69 : vector<1x1xf32> to vector<16x1xf32>
    %71 = arith.cmpf oeq, %67, %70 : vector<16x1xf32>
    %c16_i32_22 = arith.constant 16 : i32
    %72 = vector.broadcast %c16_i32_22 : i32 to vector<16x1xi32>
    %73 = arith.select %71, %15, %72 : vector<16x1xi1>, vector<16x1xi32>
    %cst_23 = arith.constant dense<2147483647> : vector<1xi32>
    %74 = vector.multi_reduction <minsi>, %73, %cst_23 [0] : vector<16x1xi32> to vector<1xi32>
    %75 = vector.shape_cast %74 : vector<1xi32> to vector<1x1xi32>
    %76 = vector.broadcast %75 : vector<1x1xi32> to vector<16x1xi32>
    %77 = arith.cmpi eq, %15, %76 : vector<16x1xi32>
    %78 = arith.extui %77 : vector<16x1xi1> to vector<16x1xi32>
    %79 = arith.sitofp %78 : vector<16x1xi32> to vector<16x1xf32>
    %80 = vector.broadcast %79 : vector<16x1xf32> to vector<16x32xf32>
    %81 = arith.mulf %1, %80 : vector<16x32xf32>
    %cst_24 = arith.constant dense<0.000000e+00> : vector<32xf32>
    %82 = vector.multi_reduction <add>, %81, %cst_24 [0] : vector<16x32xf32> to vector<32xf32>
    %83 = vector.shape_cast %82 : vector<32xf32> to vector<1x32xf32>
    %84 = vector.broadcast %69 : vector<1x1xf32> to vector<1x32xf32>
    %85 = arith.mulf %83, %84 : vector<1x32xf32>
    %c0_25 = arith.constant 0 : index
    %86 = arith.index_cast %c2_i32 : i32 to index
    %c0_26 = arith.constant 0 : index
    %87 = vector.load %arg4[%c0_25, %86, %c0_26] : memref<1x8x32xf32, #tpu.memory_space<vmem>>, vector<1x1x32xf32>
    %88 = vector.shape_cast %87 : vector<1x1x32xf32> to vector<1x32xf32>
    %89 = vector.shape_cast %85 : vector<1x32xf32> to vector<1x1x32xf32>
    tpu.vector_store %arg4[%c0_25, %86, %c0_26], %89 {strides = array<i32>} : memref<1x8x32xf32, #tpu.memory_space<vmem>>, vector<1x1x32xf32>,
    %cst_27 = arith.constant 0.000000e+00 : f32
    %90 = vector.broadcast %cst_27 : f32 to vector<16x1xf32>
    %91 = arith.cmpf ogt, %79, %90 : vector<16x1xf32>
    %cst_28 = arith.constant 0xFF800000 : f32
    %92 = vector.broadcast %cst_28 : f32 to vector<16x1xf32>
    %93 = arith.select %91, %92, %67 : vector<16x1xi1>, vector<16x1xf32>
    %c3_i32 = arith.constant 3 : i32
    %cst_29 = arith.constant dense<0xFF800000> : vector<1xf32>
    %94 = vector.multi_reduction <maximumf>, %93, %cst_29 [0] : vector<16x1xf32> to vector<1xf32>
    %95 = vector.shape_cast %94 : vector<1xf32> to vector<1x1xf32>
    %96 = vector.broadcast %95 : vector<1x1xf32> to vector<16x1xf32>
    %97 = arith.cmpf oeq, %93, %96 : vector<16x1xf32>
    %c16_i32_30 = arith.constant 16 : i32
    %98 = vector.broadcast %c16_i32_30 : i32 to vector<16x1xi32>
    %99 = arith.select %97, %15, %98 : vector<16x1xi1>, vector<16x1xi32>
    %cst_31 = arith.constant dense<2147483647> : vector<1xi32>
    %100 = vector.multi_reduction <minsi>, %99, %cst_31 [0] : vector<16x1xi32> to vector<1xi32>
    %101 = vector.shape_cast %100 : vector<1xi32> to vector<1x1xi32>
    %102 = vector.broadcast %101 : vector<1x1xi32> to vector<16x1xi32>
    %103 = arith.cmpi eq, %15, %102 : vector<16x1xi32>
    %104 = arith.extui %103 : vector<16x1xi1> to vector<16x1xi32>
    %105 = arith.sitofp %104 : vector<16x1xi32> to vector<16x1xf32>
    %106 = vector.broadcast %105 : vector<16x1xf32> to vector<16x32xf32>
    %107 = arith.mulf %1, %106 : vector<16x32xf32>
    %cst_32 = arith.constant dense<0.000000e+00> : vector<32xf32>
    %108 = vector.multi_reduction <add>, %107, %cst_32 [0] : vector<16x32xf32> to vector<32xf32>
    %109 = vector.shape_cast %108 : vector<32xf32> to vector<1x32xf32>
    %110 = vector.broadcast %95 : vector<1x1xf32> to vector<1x32xf32>
    %111 = arith.mulf %109, %110 : vector<1x32xf32>
    %c0_33 = arith.constant 0 : index
    %112 = arith.index_cast %c3_i32 : i32 to index
    %c0_34 = arith.constant 0 : index
    %113 = vector.load %arg4[%c0_33, %112, %c0_34] : memref<1x8x32xf32, #tpu.memory_space<vmem>>, vector<1x1x32xf32>
    %114 = vector.shape_cast %113 : vector<1x1x32xf32> to vector<1x32xf32>
    %115 = vector.shape_cast %111 : vector<1x32xf32> to vector<1x1x32xf32>
    tpu.vector_store %arg4[%c0_33, %112, %c0_34], %115 {strides = array<i32>} : memref<1x8x32xf32, #tpu.memory_space<vmem>>, vector<1x1x32xf32>,
    %cst_35 = arith.constant 0.000000e+00 : f32
    %116 = vector.broadcast %cst_35 : f32 to vector<16x1xf32>
    %117 = arith.cmpf ogt, %105, %116 : vector<16x1xf32>
    %cst_36 = arith.constant 0xFF800000 : f32
    %118 = vector.broadcast %cst_36 : f32 to vector<16x1xf32>
    %119 = arith.select %117, %118, %93 : vector<16x1xi1>, vector<16x1xf32>
    %c4_i32 = arith.constant 4 : i32
    %cst_37 = arith.constant dense<0xFF800000> : vector<1xf32>
    %120 = vector.multi_reduction <maximumf>, %119, %cst_37 [0] : vector<16x1xf32> to vector<1xf32>
    %121 = vector.shape_cast %120 : vector<1xf32> to vector<1x1xf32>
    %122 = vector.broadcast %121 : vector<1x1xf32> to vector<16x1xf32>
    %123 = arith.cmpf oeq, %119, %122 : vector<16x1xf32>
    %c16_i32_38 = arith.constant 16 : i32
    %124 = vector.broadcast %c16_i32_38 : i32 to vector<16x1xi32>
    %125 = arith.select %123, %15, %124 : vector<16x1xi1>, vector<16x1xi32>
    %cst_39 = arith.constant dense<2147483647> : vector<1xi32>
    %126 = vector.multi_reduction <minsi>, %125, %cst_39 [0] : vector<16x1xi32> to vector<1xi32>
    %127 = vector.shape_cast %126 : vector<1xi32> to vector<1x1xi32>
    %128 = vector.broadcast %127 : vector<1x1xi32> to vector<16x1xi32>
    %129 = arith.cmpi eq, %15, %128 : vector<16x1xi32>
    %130 = arith.extui %129 : vector<16x1xi1> to vector<16x1xi32>
    %131 = arith.sitofp %130 : vector<16x1xi32> to vector<16x1xf32>
    %132 = vector.broadcast %131 : vector<16x1xf32> to vector<16x32xf32>
    %133 = arith.mulf %1, %132 : vector<16x32xf32>
    %cst_40 = arith.constant dense<0.000000e+00> : vector<32xf32>
    %134 = vector.multi_reduction <add>, %133, %cst_40 [0] : vector<16x32xf32> to vector<32xf32>
    %135 = vector.shape_cast %134 : vector<32xf32> to vector<1x32xf32>
    %136 = vector.broadcast %121 : vector<1x1xf32> to vector<1x32xf32>
    %137 = arith.mulf %135, %136 : vector<1x32xf32>
    %c0_41 = arith.constant 0 : index
    %138 = arith.index_cast %c4_i32 : i32 to index
    %c0_42 = arith.constant 0 : index
    %139 = vector.load %arg4[%c0_41, %138, %c0_42] : memref<1x8x32xf32, #tpu.memory_space<vmem>>, vector<1x1x32xf32>
    %140 = vector.shape_cast %139 : vector<1x1x32xf32> to vector<1x32xf32>
    %141 = vector.shape_cast %137 : vector<1x32xf32> to vector<1x1x32xf32>
    tpu.vector_store %arg4[%c0_41, %138, %c0_42], %141 {strides = array<i32>} : memref<1x8x32xf32, #tpu.memory_space<vmem>>, vector<1x1x32xf32>,
    %cst_43 = arith.constant 0.000000e+00 : f32
    %142 = vector.broadcast %cst_43 : f32 to vector<16x1xf32>
    %143 = arith.cmpf ogt, %131, %142 : vector<16x1xf32>
    %cst_44 = arith.constant 0xFF800000 : f32
    %144 = vector.broadcast %cst_44 : f32 to vector<16x1xf32>
    %145 = arith.select %143, %144, %119 : vector<16x1xi1>, vector<16x1xf32>
    %c5_i32 = arith.constant 5 : i32
    %cst_45 = arith.constant dense<0xFF800000> : vector<1xf32>
    %146 = vector.multi_reduction <maximumf>, %145, %cst_45 [0] : vector<16x1xf32> to vector<1xf32>
    %147 = vector.shape_cast %146 : vector<1xf32> to vector<1x1xf32>
    %148 = vector.broadcast %147 : vector<1x1xf32> to vector<16x1xf32>
    %149 = arith.cmpf oeq, %145, %148 : vector<16x1xf32>
    %c16_i32_46 = arith.constant 16 : i32
    %150 = vector.broadcast %c16_i32_46 : i32 to vector<16x1xi32>
    %151 = arith.select %149, %15, %150 : vector<16x1xi1>, vector<16x1xi32>
    %cst_47 = arith.constant dense<2147483647> : vector<1xi32>
    %152 = vector.multi_reduction <minsi>, %151, %cst_47 [0] : vector<16x1xi32> to vector<1xi32>
    %153 = vector.shape_cast %152 : vector<1xi32> to vector<1x1xi32>
    %154 = vector.broadcast %153 : vector<1x1xi32> to vector<16x1xi32>
    %155 = arith.cmpi eq, %15, %154 : vector<16x1xi32>
    %156 = arith.extui %155 : vector<16x1xi1> to vector<16x1xi32>
    %157 = arith.sitofp %156 : vector<16x1xi32> to vector<16x1xf32>
    %158 = vector.broadcast %157 : vector<16x1xf32> to vector<16x32xf32>
    %159 = arith.mulf %1, %158 : vector<16x32xf32>
    %cst_48 = arith.constant dense<0.000000e+00> : vector<32xf32>
    %160 = vector.multi_reduction <add>, %159, %cst_48 [0] : vector<16x32xf32> to vector<32xf32>
    %161 = vector.shape_cast %160 : vector<32xf32> to vector<1x32xf32>
    %162 = vector.broadcast %147 : vector<1x1xf32> to vector<1x32xf32>
    %163 = arith.mulf %161, %162 : vector<1x32xf32>
    %c0_49 = arith.constant 0 : index
    %164 = arith.index_cast %c5_i32 : i32 to index
    %c0_50 = arith.constant 0 : index
    %165 = vector.load %arg4[%c0_49, %164, %c0_50] : memref<1x8x32xf32, #tpu.memory_space<vmem>>, vector<1x1x32xf32>
    %166 = vector.shape_cast %165 : vector<1x1x32xf32> to vector<1x32xf32>
    %167 = vector.shape_cast %163 : vector<1x32xf32> to vector<1x1x32xf32>
    tpu.vector_store %arg4[%c0_49, %164, %c0_50], %167 {strides = array<i32>} : memref<1x8x32xf32, #tpu.memory_space<vmem>>, vector<1x1x32xf32>,
    %cst_51 = arith.constant 0.000000e+00 : f32
    %168 = vector.broadcast %cst_51 : f32 to vector<16x1xf32>
    %169 = arith.cmpf ogt, %157, %168 : vector<16x1xf32>
    %cst_52 = arith.constant 0xFF800000 : f32
    %170 = vector.broadcast %cst_52 : f32 to vector<16x1xf32>
    %171 = arith.select %169, %170, %145 : vector<16x1xi1>, vector<16x1xf32>
    %c6_i32 = arith.constant 6 : i32
    %cst_53 = arith.constant dense<0xFF800000> : vector<1xf32>
    %172 = vector.multi_reduction <maximumf>, %171, %cst_53 [0] : vector<16x1xf32> to vector<1xf32>
    %173 = vector.shape_cast %172 : vector<1xf32> to vector<1x1xf32>
    %174 = vector.broadcast %173 : vector<1x1xf32> to vector<16x1xf32>
    %175 = arith.cmpf oeq, %171, %174 : vector<16x1xf32>
    %c16_i32_54 = arith.constant 16 : i32
    %176 = vector.broadcast %c16_i32_54 : i32 to vector<16x1xi32>
    %177 = arith.select %175, %15, %176 : vector<16x1xi1>, vector<16x1xi32>
    %cst_55 = arith.constant dense<2147483647> : vector<1xi32>
    %178 = vector.multi_reduction <minsi>, %177, %cst_55 [0] : vector<16x1xi32> to vector<1xi32>
    %179 = vector.shape_cast %178 : vector<1xi32> to vector<1x1xi32>
    %180 = vector.broadcast %179 : vector<1x1xi32> to vector<16x1xi32>
    %181 = arith.cmpi eq, %15, %180 : vector<16x1xi32>
    %182 = arith.extui %181 : vector<16x1xi1> to vector<16x1xi32>
    %183 = arith.sitofp %182 : vector<16x1xi32> to vector<16x1xf32>
    %184 = vector.broadcast %183 : vector<16x1xf32> to vector<16x32xf32>
    %185 = arith.mulf %1, %184 : vector<16x32xf32>
    %cst_56 = arith.constant dense<0.000000e+00> : vector<32xf32>
    %186 = vector.multi_reduction <add>, %185, %cst_56 [0] : vector<16x32xf32> to vector<32xf32>
    %187 = vector.shape_cast %186 : vector<32xf32> to vector<1x32xf32>
    %188 = vector.broadcast %173 : vector<1x1xf32> to vector<1x32xf32>
    %189 = arith.mulf %187, %188 : vector<1x32xf32>
    %c0_57 = arith.constant 0 : index
    %190 = arith.index_cast %c6_i32 : i32 to index
    %c0_58 = arith.constant 0 : index
    %191 = vector.load %arg4[%c0_57, %190, %c0_58] : memref<1x8x32xf32, #tpu.memory_space<vmem>>, vector<1x1x32xf32>
    %192 = vector.shape_cast %191 : vector<1x1x32xf32> to vector<1x32xf32>
    %193 = vector.shape_cast %189 : vector<1x32xf32> to vector<1x1x32xf32>
    tpu.vector_store %arg4[%c0_57, %190, %c0_58], %193 {strides = array<i32>} : memref<1x8x32xf32, #tpu.memory_space<vmem>>, vector<1x1x32xf32>,
    %cst_59 = arith.constant 0.000000e+00 : f32
    %194 = vector.broadcast %cst_59 : f32 to vector<16x1xf32>
    %195 = arith.cmpf ogt, %183, %194 : vector<16x1xf32>
    %cst_60 = arith.constant 0xFF800000 : f32
    %196 = vector.broadcast %cst_60 : f32 to vector<16x1xf32>
    %197 = arith.select %195, %196, %171 : vector<16x1xi1>, vector<16x1xf32>
    %c7_i32 = arith.constant 7 : i32
    %cst_61 = arith.constant dense<0xFF800000> : vector<1xf32>
    %198 = vector.multi_reduction <maximumf>, %197, %cst_61 [0] : vector<16x1xf32> to vector<1xf32>
    %199 = vector.shape_cast %198 : vector<1xf32> to vector<1x1xf32>
    %200 = vector.broadcast %199 : vector<1x1xf32> to vector<16x1xf32>
    %201 = arith.cmpf oeq, %197, %200 : vector<16x1xf32>
    %c16_i32_62 = arith.constant 16 : i32
    %202 = vector.broadcast %c16_i32_62 : i32 to vector<16x1xi32>
    %203 = arith.select %201, %15, %202 : vector<16x1xi1>, vector<16x1xi32>
    %cst_63 = arith.constant dense<2147483647> : vector<1xi32>
    %204 = vector.multi_reduction <minsi>, %203, %cst_63 [0] : vector<16x1xi32> to vector<1xi32>
    %205 = vector.shape_cast %204 : vector<1xi32> to vector<1x1xi32>
    %206 = vector.broadcast %205 : vector<1x1xi32> to vector<16x1xi32>
    %207 = arith.cmpi eq, %15, %206 : vector<16x1xi32>
    %208 = arith.extui %207 : vector<16x1xi1> to vector<16x1xi32>
    %209 = arith.sitofp %208 : vector<16x1xi32> to vector<16x1xf32>
    %210 = vector.broadcast %209 : vector<16x1xf32> to vector<16x32xf32>
    %211 = arith.mulf %1, %210 : vector<16x32xf32>
    %cst_64 = arith.constant dense<0.000000e+00> : vector<32xf32>
    %212 = vector.multi_reduction <add>, %211, %cst_64 [0] : vector<16x32xf32> to vector<32xf32>
    %213 = vector.shape_cast %212 : vector<32xf32> to vector<1x32xf32>
    %214 = vector.broadcast %199 : vector<1x1xf32> to vector<1x32xf32>
    %215 = arith.mulf %213, %214 : vector<1x32xf32>
    %c0_65 = arith.constant 0 : index
    %216 = arith.index_cast %c7_i32 : i32 to index
    %c0_66 = arith.constant 0 : index
    %217 = vector.load %arg4[%c0_65, %216, %c0_66] : memref<1x8x32xf32, #tpu.memory_space<vmem>>, vector<1x1x32xf32>
    %218 = vector.shape_cast %217 : vector<1x1x32xf32> to vector<1x32xf32>
    %219 = vector.shape_cast %215 : vector<1x32xf32> to vector<1x1x32xf32>
    tpu.vector_store %arg4[%c0_65, %216, %c0_66], %219 {strides = array<i32>} : memref<1x8x32xf32, #tpu.memory_space<vmem>>, vector<1x1x32xf32>,
    %cst_67 = arith.constant 0.000000e+00 : f32
    %220 = vector.broadcast %cst_67 : f32 to vector<16x1xf32>
    %221 = arith.cmpf ogt, %209, %220 : vector<16x1xf32>
    %cst_68 = arith.constant 0xFF800000 : f32
    %222 = vector.broadcast %cst_68 : f32 to vector<16x1xf32>
    %223 = arith.select %221, %222, %197 : vector<16x1xi1>, vector<16x1xf32>
    %c8_i32 = arith.constant 8 : i32
    return
  }
  func.func @transform_0(%arg0: i32) -> (i32, i32, i32) {
    %c0_i32 = arith.constant 0 : i32
    %c0_i32_0 = arith.constant 0 : i32
    %c0_i32_1 = arith.constant 0 : i32
    return %arg0, %c0_i32, %c0_i32_0 : i32, i32, i32
  }
  func.func @transform_1(%arg0: i32) -> (i32, i32) {
    %c0_i32 = arith.constant 0 : i32
    %c0_i32_0 = arith.constant 0 : i32
    %c0_i32_1 = arith.constant 0 : i32
    return %c0_i32, %c0_i32_0 : i32, i32
  }
  func.func @transform_2(%arg0: i32) -> i32 {
    %c0_i32 = arith.constant 0 : i32
    %c0_i32_0 = arith.constant 0 : i32
    return %c0_i32 : i32
  }
  func.func @transform_3(%arg0: i32) -> (i32, i32, i32) {
    %c0_i32 = arith.constant 0 : i32
    %c0_i32_0 = arith.constant 0 : i32
    %c0_i32_1 = arith.constant 0 : i32
    return %arg0, %c0_i32, %c0_i32_0 : i32, i32, i32
  }
}

</mosaic_0001>

<bundles_post_ra>
// kernel: tpu_custom_call.1
= control target key start
LH: loop header
LB: loop body
LE: loop exit
PB: predicated region body
PF: predicated region fallthrough
CT: control target
= control target key end

     0   :  { %s1160_s0 = inlined_call_operand.hbm [shape: f32[2,16,32], index: 0, kind: input, shape index: {}]   ;;  %s1161_s1 = inlined_call_operand.vmem [shape: f32[1,32], index: 1, kind: input, shape index: {}]   ;;  %s1162_s2 = inlined_call_operand.<no memory space> [shape: f32[1], index: 2, kind: input, shape index: {}]   ;;  %s1163_s3 = inlined_call_operand.hbm [shape: f32[2,8,32], index: 3, kind: output, shape index: {}]  }
   0x1   :  { %8 = sst [smem:[#allocation2]] %s1162_s2 }
   0x2   :  { %9 = vsyncpa [#allocation4], 0 }
   0x3   :  { %11 = vsyncpa [#allocation4 + $0x1], 0 }
   0x4   :  { %12 = vsyncpa [#allocation5], 0 }
   0x5   :  { %14 = vsyncpa [#allocation5 + $0x1], 0  ;;  %s884_s14 = smov 0   ;;  %s886_s15 = smov 0  }
   0x6   :  { %s888_s16 = smov 0   ;;  %s890_s17 = smov 0  }
   0x7 LB: > { %s905_s2 = sadd.s32 4294967295, %s854_s17   ;;  %s668_s18 = sadd.s32 4294967294, %s854_s17   ;;  %s854_s17 = sphi %s890_s17, %s1176_s17   ;;  %s850_s16 = sphi %s888_s16, %s1175_s16   ;;  %s846_s15 = sphi %s886_s15, %s1174_s15   ;;  %s842_s14 = sphi %s884_s14, %s1173_s14  }
   0x8   : > { %s909_s19 = sadd.s32 1, %s854_s17   ;;  %s27_s20 = sadd.s32 1, %s850_s16 }
   0x9   : > { %s24_s21 = ssub.s32 %s854_s17, %s909_s19  ;;  %p34_p0 = scmp.ne.s32.totalorder %s850_s16, %s846_s15 }
   0xa   : > { %p25_p1 = scmp.eq.s32.totalorder %s24_s21, 0  ;;  %p35_p2 = scmp.eq.s32.totalorder %s854_s17, 0 }
   0xb   : > { %p40_p3 = scmp.ne.s32.totalorder %s846_s15, %s842_s14  ;;  %p41_p4 = scmp.eq.s32.totalorder %s905_s2, 0 }
   0xc   : > { %s921_s22 = scalar_select %p25_p1, %s850_s16, %s27_s20  }
   0xd   : > { %p923_p5 = por %p35_p2, %p34_p0  ;;  %p927_p6 = por %p41_p4, %p40_p3 }
   0xe   : > { %p106_p7 = scmp.eq.s32.totalorder %s905_s2, 1  ;;  %p112_p8 = scmp.eq.s32.totalorder %s668_s18, 1 }
   0xf   : > { %p713_p10 = scmp.lt.s32.totalorder %s854_s17, 2  ;;  %s138_s27 = sand.u32 1, %s850_s16  }
  0x10   : > { %p934_p11 = por %p106_p7, %p34_p0  ;;  %p938_p12 = por %p112_p8, %p40_p3 }
  0x11   : > { %s700_s28 = sshll.u32 %s854_s17, 8  ;;  %s671_s29 = sshll.u32 %s138_s27, 4 }
  0x12   : > { %s1167_s25 = scalar_select %p934_p11, 1, 0 }
  0x13   : > { %s1168_s26 = scalar_select %p938_p12, 1, 0 }
  0x14   : > { %s947_s5 = scalar_lea.hbm %s1160_s0, %s700_s28  ;;  %s142_s6 = scalar_lea.vmem [#allocation3], %s671_s29 }
  0x15   : > { %s149_s7 = sshll.u32 %s142_s6, 4  ;;  %p951_p13 = pnand %p713_p10, %p923_p5  ;;  %s955_s7 = int_to_ptr.vmem [resolvable:$true] %s149_s7 }
  0x16   : > { %s957_s9 = scalar_lea.sflag [#allocation4], %s138_s27  ;;  %s758_s10 = scalar_lea.hbm %s947_s5, 256 }
  0x17   : > { %p759_p0 = scmp.ne.s32.totalorder %s947_s5, %s758_s10  ;;  %p760_p1 = pneg %p951_p13 }
  0x18   : > { %s763_s13 = scalar_lea.hbm %s1160_s0, 512  ;;  %p764_p4 = scmp.lt.u32.totalorder %s947_s5, %s1160_s0 }
  0x19   : > { %p761_p2 = pnand %p760_p1, %p759_p0  ;;  %p765_p5 = scmp.lt.u32.totalorder %s763_s13, %s758_s10 }
  0x1a   : > { %p767_p8 = scmp.lt.u32.totalorder %s758_s10, %s947_s5 }
  0x1b   : > { %p762_p3 = pneg %p761_p2  ;;  %p766_p7 = por %p765_p5, %p764_p4 }
  0x1d   : > { %p768_p10 = por %p767_p8, %p766_p7 }
  0x1f   : > { %p769_p9 = pnand %p768_p10, %p762_p3 }
  0x21   : > { %772 = shalt.err (!%p769_p9)
}
  0x22   : > { %s773_s21 = scalar_lea.vmem %s955_s7, 256  ;;  %s856_s23 = smov [#allocation3]  }
  0x23   : > { %p774_p0 = scmp.ne.s32.totalorder %s955_s7, %s773_s21  ;;  %s778_s27 = sshll.u32 %s856_s23, 4  ;;  %s779_s27 = int_to_ptr.vmem [resolvable:$false] %s778_s27 }
  0x24   : > { %s780_s28 = scalar_lea.vmem %s779_s27, 512  ;;  %p781_p11 = scmp.lt.s32.totalorder %s955_s7, %s779_s27 }
  0x25   : > { %p776_p2 = pnand %p774_p0, %p760_p1  ;;  %p782_p4 = scmp.lt.s32.totalorder %s780_s28, %s773_s21 }
  0x27   : > { %p777_p12 = pneg %p776_p2  ;;  %p783_p5 = por %p782_p4, %p781_p11 }
  0x29   : > { %p784_p7 = pnand %p783_p5, %p777_p12 }
  0x2b   : > { %787 = shalt.err (!%p784_p7)
}
  0x2c   : > { %s857_s29 = smov 128   ;;  %s858_s30 = smov 8  }
  0x2d   : > { %708 = dma.hbm_to_vmem [thread:$0]  (!%p951_p13), %s947_s5, 256, %s955_s7, %s957_s9, %s857_s29, %s857_s29, %s858_s30  }
  0x2e   : > { %p674_p9 = scmp.ge.s32.totalorder %s854_s17, 1  ;;  %p157_p1 = scmp.lt.s32.totalorder %s854_s17, 3 }
  0x30   : > { %p158_p3 = pnand %p674_p9, %p157_p1 }
  0x31   : > { %s988_s4 = sand.u32 (!%p158_p3), 1, %s846_s15  }
  0x32   : > { %161 = sbr.rel (%p158_p3) target bundleno = 540 (0x21c), region = 32  ;;  %s675_s6 = sshll.u32 (!%p158_p3), %s988_s4, 4 }
  0x33   : > { %s164_s10 = scalar_lea.sflag (!%p158_p3), [#allocation4], %s988_s4  ;;  %s167_s11 = scalar_lea.vmem (!%p158_p3), [#allocation3], %s675_s6 }
  0x39   : > { %833 = dma.done.wait (%p927_p6), %s164_s10, 256  }
  0x3a   : > { %835 = vsyncadd (%p927_p6), %s164_s10, 4294967040  ;;  %v996_v0 = vld [vmem:[%s167_s11] sm:$0xff]  ;;  %vm201_vm0 = vcmask 261120   ;;  %v1001_v2 = vld [vmem:[%s167_s11 + $0x8] sm:$0xff]  ;;  %s208_s24 = sld [smem:[#allocation2]]  ;;  %v224_v22 = vlaneseq  ;;  %v859_v39 = vmov 0.0  }
  0x3b   : > { %v677_v1 = vld [vmem:[%s1161_s1] ss:$0 sm:$0xff]  ;;  %s676_s8 = sshll.u32 %s988_s4, 3  ;;  %vm267_vm13 = vcmask 253952   ;;  %s697_s12 = sshll.u32 %s905_s2, 7 }
  0x3c   : > { %v199_v3 = vmul.f32 %v677_v1, %v996_v0  ;;  %v200_v4 = vmul.f32 %v677_v1, %v1001_v2  ;;  %v1007_v25 = vshrl.u32 %v224_v22, 7  ;;  %s1025_s9 = scalar_lea.vmem [#allocation6], %s676_s8  ;;  %s1114_s21 = scalar_lea.hbm %s1163_s3, %s697_s12 }
  0x3d   : > { %s598_s13 = sshll.u32 %s1025_s9, 4  ;;  %s585_s23 = scalar_lea.sflag [#allocation5], %s988_s4  ;;  %s1116_s13 = int_to_ptr.vmem [resolvable:$true] %s598_s13 }
  0x3e   : > { %v202_v5 = vsel %vm201_vm0, %v199_v3, 0.0  ;;  %v205_v6 = vsel %vm201_vm0, %v200_v4, 0.0  ;;  %v1010_v28 = vadd.s32 8, %v1007_v25  ;;  %s788_s27 = scalar_lea.vmem %s1116_s13, 128  ;;  %p1170_p11 = scmp.ne.s32.totalorder %s1167_s25, 0 }
  0x3f   : > { %203 = vadd.xlane.f32.xlu0 %v202_v5  ;;  %p789_p6 = scmp.ne.s32.totalorder %s1116_s13, %s788_s27  ;;  %s860_s2 = smov [#allocation6]  }
  0x40   : > { %v209_v7 = vstv %s208_s24  ;;  %s792_s28 = sshll.u32 %s860_s2, 4  ;;  %s793_s28 = int_to_ptr.vmem [resolvable:$false] %s792_s28 }
  0x41   : > { %p790_p12 = pnand %p789_p6, %p1170_p11  ;;  %s794_s29 = scalar_lea.vmem %s793_s28, 256 }
  0x42   : > { %p795_p8 = scmp.lt.s32.totalorder %s1116_s13, %s793_s28  ;;  %p796_p10 = scmp.lt.s32.totalorder %s794_s29, %s788_s27 }
  0x43   : > { %206 = vadd.xlane.f32.xlu0 %v205_v6  ;;  %p791_p13 = pneg %p790_p12 }
  0x44   : > { %p797_p0 = por %p796_p10, %p795_p8 }
  0x46   : > { %p798_p2 = pnand %p797_p0, %p791_p13 }
  0xcc   : > { %v204_v8 = vpop.xlane.xlu0 %203 }
  0xcd   : > { %v210_v9 = vadd.f32 %v209_v7, %v204_v8 }
  0xcf   : > { %v678_v10 = vmul.f32 -1.442695, %v210_v9 }
  0xd0   : > { %v207_v11 = vpop.xlane.xlu0 %206 }
  0xd1   : > { %750 = vpow2.f32 %v678_v10  ;;  %v211_v12 = vadd.f32 %v209_v7, %v207_v11 }
  0xd3   : > { %v679_v13 = vmul.f32 -1.442695, %v211_v12 }
  0xd5   : > { %752 = vpow2.f32 %v679_v13 }
  0xdb   : > { %v751_v14 = vpop.eup %750 }
  0xdc   : > { %v218_v15 = vadd.f32 1.0, %v751_v14 }
  0xde   : > { %754 = vrcp.f32 %v218_v15 }
  0xdf   : > { %v753_v16 = vpop.eup %752 }
  0xe0   : > { %v219_v17 = vadd.f32 1.0, %v753_v16 }
  0xe2   : > { %756 = vrcp.f32 %v219_v17 }
  0xe8   : > { %v755_v18 = vpop.eup %754 }
  0xec   : > { %v757_v19 = vpop.eup %756 }
  0xed   : > { %v227_v20 = vmax.f32 %v755_v18, %v757_v19 }
  0xef   : > { %v228_v21 = vrot.slane %v227_v20, 4 }
  0xf1   : > { %v229_v23 = vmax.f32 %v227_v20, %v228_v21 }
  0xf3   : > { %v230_v24 = vrot.slane %v229_v23, 2 }
  0xf5   : > { %v231_v26 = vmax.f32 %v229_v23, %v230_v24 }
  0xf7   : > { %v232_v27 = vrot.slane %v231_v26, 1 }
  0xf9   : > { %v233_v29 = vmax.f32 %v231_v26, %v232_v27 }
  0xfb   : > { %vm234_vm1 = vcmp.eq.f32.partialorder %v755_v18, %v233_v29  ;;  %vm235_vm2 = vcmp.eq.f32.partialorder %v757_v19, %v233_v29 }
  0xfc   : > { %v236_v30 = vsel %vm234_vm1, %v1007_v25, 16  ;;  %v237_v31 = vsel %vm235_vm2, %v1010_v28, 16 }
  0xfd   : > { %vm238_vm3 = vcmp.lt.s32.totalorder %v236_v30, %v237_v31 }
  0xfe   : > { %v239_v32 = vsel %vm238_vm3, %v236_v30, %v237_v31 }
  0xff   : > { %v240_v33 = vrot.slane %v239_v32, 4 }
 0x101   : > { %vm241_vm4 = vcmp.lt.s32.totalorder %v239_v32, %v240_v33 }
 0x102   : > { %v242_v34 = vsel %vm241_vm4, %v239_v32, %v240_v33 }
 0x103   : > { %v243_v35 = vrot.slane %v242_v34, 2 }
 0x105   : > { %vm244_vm5 = vcmp.lt.s32.totalorder %v242_v34, %v243_v35 }
 0x106   : > { %v245_v36 = vsel %vm244_vm5, %v242_v34, %v243_v35 }
 0x107   : > { %v246_v37 = vrot.slane %v245_v36, 1 }
 0x109   : > { %vm247_vm6 = vcmp.lt.s32.totalorder %v245_v36, %v246_v37 }
 0x10a   : > { %v248_v38 = vsel %vm247_vm6, %v245_v36, %v246_v37 }
 0x10b   : > { %vm249_vm7 = vcmp.eq.s32.totalorder %v1007_v25, %v248_v38  ;;  %vm250_vm8 = vcmp.eq.s32.totalorder %v1010_v28, %v248_v38 }
 0x10c   : > { %v680_v40 = vsel %vm249_vm7, 1.0, %v859_v39  ;;  %v681_v41 = vsel %vm250_vm8, 1.0, %v859_v39 }
 0x10d   : > { %v255_v42 = vmul.f32 %v680_v40, %v996_v0  ;;  %v256_v43 = vmul.f32 %v681_v41, %v1001_v2  ;;  %vm269_vm9 = vcmp.gt.f32.partialorder %v680_v40, 0.0  ;;  %vm270_vm10 = vcmp.gt.f32.partialorder %v681_v41, 0.0 }
 0x10e   : > { %v271_v44 = vsel %vm269_vm9, -inf, %v755_v18  ;;  %v272_v45 = vsel %vm270_vm10, -inf, %v757_v19 }
 0x10f   : > { %v257_v46 = vsel %vm201_vm0, %v255_v42, 0.0  ;;  %v258_v47 = vsel %vm201_vm0, %v256_v43, 0.0  ;;  %v273_v48 = vmax.f32 %v271_v44, %v272_v45 }
 0x110   : > { %v259_v49 = vadd.f32 %v258_v47, %v257_v46 }
 0x111   : > { %v274_v50 = vrot.slane %v273_v48, 4 }
 0x112   : > { %v260_v51 = vrot.slane %v259_v49, 4 }
 0x113   : > { %v275_v52 = vmax.f32 %v273_v48, %v274_v50 }
 0x114   : > { %v261_v53 = vadd.f32 %v260_v51, %v259_v49 }
 0x115   : > { %v276_v54 = vrot.slane %v275_v52, 2 }
 0x116   : > { %v262_v55 = vrot.slane %v261_v53, 2 }
 0x117   : > { %v277_v56 = vmax.f32 %v275_v52, %v276_v54 }
 0x118   : > { %v263_v57 = vadd.f32 %v262_v55, %v261_v53 }
 0x119   : > { %v278_v58 = vrot.slane %v277_v56, 1 }
 0x11a   : > { %v264_v59 = vrot.slane %v263_v57, 1 }
 0x11b   : > { %v279_v60 = vmax.f32 %v277_v56, %v278_v58 }
 0x11c   : > { %v265_v61 = vadd.f32 %v264_v59, %v263_v57 }
 0x11d   : > { %vm280_vm11 = vcmp.eq.f32.partialorder %v271_v44, %v279_v60  ;;  %vm281_vm12 = vcmp.eq.f32.partialorder %v272_v45, %v279_v60 }
 0x11e   : > { %v266_v62 = vmul.f32 %v265_v61, %v233_v29  ;;  %v282_v63 = vsel %vm280_vm11, %v1007_v25, 16  ;;  %v283_v1 = vsel %vm281_vm12, %v1010_v28, 16 }
 0x11f   : > { %vm284_vm14 = vcmp.lt.s32.totalorder %v282_v63, %v283_v1 }
 0x120   : > { %v285_v3 = vsel %vm284_vm14, %v282_v63, %v283_v1  ;;  %268 = vst.msk [vmem:[%s1025_s9] sm:$0x1] %vm267_vm13, %v266_v62 }
 0x121   : > { %v286_v4 = vrot.slane %v285_v3, 4 }
 0x123   : > { %vm287_vm15 = vcmp.lt.s32.totalorder %v285_v3, %v286_v4 }
 0x124   : > { %v288_v5 = vsel %vm287_vm15, %v285_v3, %v286_v4 }
 0x125   : > { %v289_v6 = vrot.slane %v288_v5, 2 }
 0x127   : > { %vm290_vm1 = vcmp.lt.s32.totalorder %v288_v5, %v289_v6 }
 0x128   : > { %v291_v7 = vsel %vm290_vm1, %v288_v5, %v289_v6 }
 0x129   : > { %v292_v8 = vrot.slane %v291_v7, 1 }
 0x12b   : > { %vm293_vm2 = vcmp.lt.s32.totalorder %v291_v7, %v292_v8 }
 0x12c   : > { %v294_v9 = vsel %vm293_vm2, %v291_v7, %v292_v8 }
 0x12d   : > { %vm295_vm3 = vcmp.eq.s32.totalorder %v1007_v25, %v294_v9  ;;  %vm296_vm4 = vcmp.eq.s32.totalorder %v1010_v28, %v294_v9 }
 0x12e   : > { %v682_v10 = vsel %vm295_vm3, 1.0, %v859_v39  ;;  %v683_v11 = vsel %vm296_vm4, 1.0, %v859_v39 }
 0x12f   : > { %v301_v12 = vmul.f32 %v682_v10, %v996_v0  ;;  %v302_v13 = vmul.f32 %v683_v11, %v1001_v2  ;;  %vm314_vm5 = vcmp.gt.f32.partialorder %v682_v10, 0.0  ;;  %vm315_vm6 = vcmp.gt.f32.partialorder %v683_v11, 0.0 }
 0x130   : > { %v316_v14 = vsel %vm314_vm5, -inf, %v271_v44  ;;  %v317_v15 = vsel %vm315_vm6, -inf, %v272_v45 }
 0x131   : > { %v303_v16 = vsel %vm201_vm0, %v301_v12, 0.0  ;;  %v304_v17 = vsel %vm201_vm0, %v302_v13, 0.0  ;;  %v318_v18 = vmax.f32 %v316_v14, %v317_v15 }
 0x132   : > { %v305_v19 = vadd.f32 %v304_v17, %v303_v16 }
 0x133   : > { %v319_v20 = vrot.slane %v318_v18, 4 }
 0x134   : > { %v306_v21 = vrot.slane %v305_v19, 4 }
 0x135   : > { %v320_v22 = vmax.f32 %v318_v18, %v319_v20 }
 0x136   : > { %v307_v23 = vadd.f32 %v306_v21, %v305_v19 }
 0x137   : > { %v321_v24 = vrot.slane %v320_v22, 2 }
 0x138   : > { %v308_v26 = vrot.slane %v307_v23, 2 }
 0x139   : > { %v322_v27 = vmax.f32 %v320_v22, %v321_v24 }
 0x13a   : > { %v309_v29 = vadd.f32 %v308_v26, %v307_v23 }
 0x13b   : > { %v323_v30 = vrot.slane %v322_v27, 1 }
 0x13c   : > { %v310_v31 = vrot.slane %v309_v29, 1 }
 0x13d   : > { %v324_v32 = vmax.f32 %v322_v27, %v323_v30 }
 0x13e   : > { %v311_v33 = vadd.f32 %v310_v31, %v309_v29 }
 0x13f   : > { %vm325_vm7 = vcmp.eq.f32.partialorder %v316_v14, %v324_v32  ;;  %vm326_vm8 = vcmp.eq.f32.partialorder %v317_v15, %v324_v32 }
 0x140   : > { %v312_v34 = vmul.f32 %v311_v33, %v279_v60  ;;  %v327_v35 = vsel %vm325_vm7, %v1007_v25, 16  ;;  %v328_v36 = vsel %vm326_vm8, %v1010_v28, 16 }
 0x141   : > { %vm329_vm9 = vcmp.lt.s32.totalorder %v327_v35, %v328_v36 }
 0x142   : > { %v330_v37 = vsel %vm329_vm9, %v327_v35, %v328_v36  ;;  %313 = vst.msk [vmem:[%s1025_s9 + $0x1] sm:$0x1] %vm267_vm13, %v312_v34 }
 0x143   : > { %v331_v38 = vrot.slane %v330_v37, 4 }
 0x145   : > { %vm332_vm10 = vcmp.lt.s32.totalorder %v330_v37, %v331_v38 }
 0x146   : > { %v333_v40 = vsel %vm332_vm10, %v330_v37, %v331_v38 }
 0x147   : > { %v334_v41 = vrot.slane %v333_v40, 2 }
 0x149   : > { %vm335_vm11 = vcmp.lt.s32.totalorder %v333_v40, %v334_v41 }
 0x14a   : > { %v336_v42 = vsel %vm335_vm11, %v333_v40, %v334_v41 }
 0x14b   : > { %v337_v43 = vrot.slane %v336_v42, 1 }
 0x14d   : > { %vm338_vm12 = vcmp.lt.s32.totalorder %v336_v42, %v337_v43 }
 0x14e   : > { %v339_v44 = vsel %vm338_vm12, %v336_v42, %v337_v43 }
 0x14f   : > { %vm340_vm14 = vcmp.eq.s32.totalorder %v1007_v25, %v339_v44  ;;  %vm341_vm15 = vcmp.eq.s32.totalorder %v1010_v28, %v339_v44 }
 0x150   : > { %v684_v45 = vsel %vm340_vm14, 1.0, %v859_v39  ;;  %v685_v46 = vsel %vm341_vm15, 1.0, %v859_v39 }
 0x151   : > { %v346_v47 = vmul.f32 %v684_v45, %v996_v0  ;;  %v347_v48 = vmul.f32 %v685_v46, %v1001_v2  ;;  %vm359_vm1 = vcmp.gt.f32.partialorder %v684_v45, 0.0  ;;  %vm360_vm2 = vcmp.gt.f32.partialorder %v685_v46, 0.0 }
 0x152   : > { %v361_v49 = vsel %vm359_vm1, -inf, %v316_v14  ;;  %v362_v50 = vsel %vm360_vm2, -inf, %v317_v15 }
 0x153   : > { %v348_v51 = vsel %vm201_vm0, %v346_v47, 0.0  ;;  %v349_v52 = vsel %vm201_vm0, %v347_v48, 0.0  ;;  %v363_v53 = vmax.f32 %v361_v49, %v362_v50 }
 0x154   : > { %v350_v54 = vadd.f32 %v349_v52, %v348_v51 }
 0x155   : > { %v364_v55 = vrot.slane %v363_v53, 4 }
 0x156   : > { %v351_v56 = vrot.slane %v350_v54, 4 }
 0x157   : > { %v365_v57 = vmax.f32 %v363_v53, %v364_v55 }
 0x158   : > { %v352_v58 = vadd.f32 %v351_v56, %v350_v54 }
 0x159   : > { %v366_v59 = vrot.slane %v365_v57, 2 }
 0x15a   : > { %v353_v60 = vrot.slane %v352_v58, 2 }
 0x15b   : > { %v367_v61 = vmax.f32 %v365_v57, %v366_v59 }
 0x15c   : > { %v354_v62 = vadd.f32 %v353_v60, %v352_v58 }
 0x15d   : > { %v368_v63 = vrot.slane %v367_v61, 1 }
 0x15e   : > { %v355_v1 = vrot.slane %v354_v62, 1 }
 0x15f   : > { %v369_v3 = vmax.f32 %v367_v61, %v368_v63 }
 0x160   : > { %v356_v4 = vadd.f32 %v355_v1, %v354_v62 }
 0x161   : > { %vm370_vm3 = vcmp.eq.f32.partialorder %v361_v49, %v369_v3  ;;  %vm371_vm4 = vcmp.eq.f32.partialorder %v362_v50, %v369_v3 }
 0x162   : > { %v357_v5 = vmul.f32 %v356_v4, %v324_v32  ;;  %v372_v6 = vsel %vm370_vm3, %v1007_v25, 16  ;;  %v373_v7 = vsel %vm371_vm4, %v1010_v28, 16 }
 0x163   : > { %vm374_vm5 = vcmp.lt.s32.totalorder %v372_v6, %v373_v7 }
 0x164   : > { %v375_v8 = vsel %vm374_vm5, %v372_v6, %v373_v7  ;;  %358 = vst.msk [vmem:[%s1025_s9 + $0x2] sm:$0x1] %vm267_vm13, %v357_v5 }
 0x165   : > { %v376_v9 = vrot.slane %v375_v8, 4 }
 0x167   : > { %vm377_vm6 = vcmp.lt.s32.totalorder %v375_v8, %v376_v9 }
 0x168   : > { %v378_v10 = vsel %vm377_vm6, %v375_v8, %v376_v9 }
 0x169   : > { %v379_v11 = vrot.slane %v378_v10, 2 }
 0x16b   : > { %vm380_vm7 = vcmp.lt.s32.totalorder %v378_v10, %v379_v11 }
 0x16c   : > { %v381_v12 = vsel %vm380_vm7, %v378_v10, %v379_v11 }
 0x16d   : > { %v382_v13 = vrot.slane %v381_v12, 1 }
 0x16f   : > { %vm383_vm8 = vcmp.lt.s32.totalorder %v381_v12, %v382_v13 }
 0x170   : > { %v384_v14 = vsel %vm383_vm8, %v381_v12, %v382_v13 }
 0x171   : > { %vm385_vm9 = vcmp.eq.s32.totalorder %v1007_v25, %v384_v14  ;;  %vm386_vm10 = vcmp.eq.s32.totalorder %v1010_v28, %v384_v14 }
 0x172   : > { %v686_v15 = vsel %vm385_vm9, 1.0, %v859_v39  ;;  %v687_v16 = vsel %vm386_vm10, 1.0, %v859_v39 }
 0x173   : > { %v391_v17 = vmul.f32 %v686_v15, %v996_v0  ;;  %v392_v18 = vmul.f32 %v687_v16, %v1001_v2  ;;  %vm404_vm11 = vcmp.gt.f32.partialorder %v686_v15, 0.0  ;;  %vm405_vm12 = vcmp.gt.f32.partialorder %v687_v16, 0.0 }
 0x174   : > { %v406_v19 = vsel %vm404_vm11, -inf, %v361_v49  ;;  %v407_v20 = vsel %vm405_vm12, -inf, %v362_v50 }
 0x175   : > { %v393_v21 = vsel %vm201_vm0, %v391_v17, 0.0  ;;  %v394_v22 = vsel %vm201_vm0, %v392_v18, 0.0  ;;  %v408_v23 = vmax.f32 %v406_v19, %v407_v20 }
 0x176   : > { %v395_v24 = vadd.f32 %v394_v22, %v393_v21 }
 0x177   : > { %v409_v26 = vrot.slane %v408_v23, 4 }
 0x178   : > { %v396_v27 = vrot.slane %v395_v24, 4 }
 0x179   : > { %v410_v29 = vmax.f32 %v408_v23, %v409_v26 }
 0x17a   : > { %v397_v30 = vadd.f32 %v396_v27, %v395_v24 }
 0x17b   : > { %v411_v31 = vrot.slane %v410_v29, 2 }
 0x17c   : > { %v398_v32 = vrot.slane %v397_v30, 2 }
 0x17d   : > { %v412_v33 = vmax.f32 %v410_v29, %v411_v31 }
 0x17e   : > { %v399_v34 = vadd.f32 %v398_v32, %v397_v30 }
 0x17f   : > { %v413_v35 = vrot.slane %v412_v33, 1 }
 0x180   : > { %v400_v36 = vrot.slane %v399_v34, 1 }
 0x181   : > { %v414_v37 = vmax.f32 %v412_v33, %v413_v35 }
 0x182   : > { %v401_v38 = vadd.f32 %v400_v36, %v399_v34 }
 0x183   : > { %vm415_vm14 = vcmp.eq.f32.partialorder %v406_v19, %v414_v37  ;;  %vm416_vm15 = vcmp.eq.f32.partialorder %v407_v20, %v414_v37 }
 0x184   : > { %v417_v40 = vsel %vm415_vm14, %v1007_v25, 16  ;;  %v418_v41 = vsel %vm416_vm15, %v1010_v28, 16  ;;  %v402_v42 = vmul.f32 %v401_v38, %v369_v3 }
 0x185   : > { %vm419_vm1 = vcmp.lt.s32.totalorder %v417_v40, %v418_v41 }
 0x186   : > { %v420_v43 = vsel %vm419_vm1, %v417_v40, %v418_v41  ;;  %403 = vst.msk [vmem:[%s1025_s9 + $0x3] sm:$0x1] %vm267_vm13, %v402_v42 }
 0x187   : > { %v421_v44 = vrot.slane %v420_v43, 4 }
 0x189   : > { %vm422_vm2 = vcmp.lt.s32.totalorder %v420_v43, %v421_v44 }
 0x18a   : > { %v423_v45 = vsel %vm422_vm2, %v420_v43, %v421_v44 }
 0x18b   : > { %v424_v46 = vrot.slane %v423_v45, 2 }
 0x18d   : > { %vm425_vm3 = vcmp.lt.s32.totalorder %v423_v45, %v424_v46 }
 0x18e   : > { %v426_v47 = vsel %vm425_vm3, %v423_v45, %v424_v46 }
 0x18f   : > { %v427_v48 = vrot.slane %v426_v47, 1 }
 0x191   : > { %vm428_vm4 = vcmp.lt.s32.totalorder %v426_v47, %v427_v48 }
 0x192   : > { %v429_v49 = vsel %vm428_vm4, %v426_v47, %v427_v48 }
 0x193   : > { %vm430_vm5 = vcmp.eq.s32.totalorder %v1007_v25, %v429_v49  ;;  %vm431_vm6 = vcmp.eq.s32.totalorder %v1010_v28, %v429_v49 }
 0x194   : > { %v688_v50 = vsel %vm430_vm5, 1.0, %v859_v39  ;;  %v689_v51 = vsel %vm431_vm6, 1.0, %v859_v39 }
 0x195   : > { %v436_v52 = vmul.f32 %v688_v50, %v996_v0  ;;  %v437_v53 = vmul.f32 %v689_v51, %v1001_v2  ;;  %vm449_vm7 = vcmp.gt.f32.partialorder %v688_v50, 0.0  ;;  %vm450_vm8 = vcmp.gt.f32.partialorder %v689_v51, 0.0 }
 0x196   : > { %v451_v54 = vsel %vm449_vm7, -inf, %v406_v19  ;;  %v452_v55 = vsel %vm450_vm8, -inf, %v407_v20 }
 0x197   : > { %v438_v56 = vsel %vm201_vm0, %v436_v52, 0.0  ;;  %v439_v57 = vsel %vm201_vm0, %v437_v53, 0.0  ;;  %v453_v58 = vmax.f32 %v451_v54, %v452_v55 }
 0x198   : > { %v440_v59 = vadd.f32 %v439_v57, %v438_v56 }
 0x199   : > { %v454_v60 = vrot.slane %v453_v58, 4 }
 0x19a   : > { %v441_v61 = vrot.slane %v440_v59, 4 }
 0x19b   : > { %v455_v62 = vmax.f32 %v453_v58, %v454_v60 }
 0x19c   : > { %v442_v63 = vadd.f32 %v441_v61, %v440_v59 }
 0x19d   : > { %v456_v1 = vrot.slane %v455_v62, 2 }
 0x19e   : > { %v443_v3 = vrot.slane %v442_v63, 2 }
 0x19f   : > { %v457_v4 = vmax.f32 %v455_v62, %v456_v1 }
 0x1a0   : > { %v444_v5 = vadd.f32 %v443_v3, %v442_v63 }
 0x1a1   : > { %v458_v6 = vrot.slane %v457_v4, 1 }
 0x1a2   : > { %v445_v7 = vrot.slane %v444_v5, 1 }
 0x1a3   : > { %v459_v8 = vmax.f32 %v457_v4, %v458_v6 }
 0x1a4   : > { %v446_v9 = vadd.f32 %v445_v7, %v444_v5 }
 0x1a5   : > { %vm460_vm9 = vcmp.eq.f32.partialorder %v451_v54, %v459_v8  ;;  %vm461_vm10 = vcmp.eq.f32.partialorder %v452_v55, %v459_v8 }
 0x1a6   : > { %v462_v10 = vsel %vm460_vm9, %v1007_v25, 16  ;;  %v463_v11 = vsel %vm461_vm10, %v1010_v28, 16  ;;  %v447_v12 = vmul.f32 %v446_v9, %v414_v37 }
 0x1a7   : > { %vm464_vm11 = vcmp.lt.s32.totalorder %v462_v10, %v463_v11 }
 0x1a8   : > { %v465_v13 = vsel %vm464_vm11, %v462_v10, %v463_v11  ;;  %448 = vst.msk [vmem:[%s1025_s9 + $0x4] sm:$0x1] %vm267_vm13, %v447_v12 }
 0x1a9   : > { %v466_v14 = vrot.slane %v465_v13, 4 }
 0x1ab   : > { %vm467_vm12 = vcmp.lt.s32.totalorder %v465_v13, %v466_v14 }
 0x1ac   : > { %v468_v15 = vsel %vm467_vm12, %v465_v13, %v466_v14 }
 0x1ad   : > { %v469_v16 = vrot.slane %v468_v15, 2 }
 0x1af   : > { %vm470_vm14 = vcmp.lt.s32.totalorder %v468_v15, %v469_v16 }
 0x1b0   : > { %v471_v17 = vsel %vm470_vm14, %v468_v15, %v469_v16 }
 0x1b1   : > { %v472_v18 = vrot.slane %v471_v17, 1 }
 0x1b3   : > { %vm473_vm15 = vcmp.lt.s32.totalorder %v471_v17, %v472_v18 }
 0x1b4   : > { %v474_v19 = vsel %vm473_vm15, %v471_v17, %v472_v18 }
 0x1b5   : > { %vm475_vm1 = vcmp.eq.s32.totalorder %v1007_v25, %v474_v19  ;;  %vm476_vm2 = vcmp.eq.s32.totalorder %v1010_v28, %v474_v19 }
 0x1b6   : > { %v690_v20 = vsel %vm475_vm1, 1.0, %v859_v39  ;;  %v691_v21 = vsel %vm476_vm2, 1.0, %v859_v39 }
 0x1b7   : > { %v481_v22 = vmul.f32 %v690_v20, %v996_v0  ;;  %v482_v23 = vmul.f32 %v691_v21, %v1001_v2  ;;  %vm494_vm3 = vcmp.gt.f32.partialorder %v690_v20, 0.0  ;;  %vm495_vm4 = vcmp.gt.f32.partialorder %v691_v21, 0.0 }
 0x1b8   : > { %v496_v24 = vsel %vm494_vm3, -inf, %v451_v54  ;;  %v497_v26 = vsel %vm495_vm4, -inf, %v452_v55 }
 0x1b9   : > { %v483_v27 = vsel %vm201_vm0, %v481_v22, 0.0  ;;  %v484_v29 = vsel %vm201_vm0, %v482_v23, 0.0  ;;  %v498_v30 = vmax.f32 %v496_v24, %v497_v26 }
 0x1ba   : > { %v485_v31 = vadd.f32 %v484_v29, %v483_v27 }
 0x1bb   : > { %v499_v32 = vrot.slane %v498_v30, 4 }
 0x1bc   : > { %v486_v33 = vrot.slane %v485_v31, 4 }
 0x1bd   : > { %v500_v34 = vmax.f32 %v498_v30, %v499_v32 }
 0x1be   : > { %v487_v35 = vadd.f32 %v486_v33, %v485_v31 }
 0x1bf   : > { %v501_v36 = vrot.slane %v500_v34, 2 }
 0x1c0   : > { %v488_v37 = vrot.slane %v487_v35, 2 }
 0x1c1   : > { %v502_v38 = vmax.f32 %v500_v34, %v501_v36 }
 0x1c2   : > { %v489_v40 = vadd.f32 %v488_v37, %v487_v35 }
 0x1c3   : > { %v503_v41 = vrot.slane %v502_v38, 1 }
 0x1c4   : > { %v490_v42 = vrot.slane %v489_v40, 1 }
 0x1c5   : > { %v504_v43 = vmax.f32 %v502_v38, %v503_v41 }
 0x1c6   : > { %v491_v44 = vadd.f32 %v490_v42, %v489_v40 }
 0x1c7   : > { %vm505_vm5 = vcmp.eq.f32.partialorder %v496_v24, %v504_v43  ;;  %vm506_vm6 = vcmp.eq.f32.partialorder %v497_v26, %v504_v43 }
 0x1c8   : > { %v507_v45 = vsel %vm505_vm5, %v1007_v25, 16  ;;  %v508_v46 = vsel %vm506_vm6, %v1010_v28, 16  ;;  %v492_v47 = vmul.f32 %v491_v44, %v459_v8 }
 0x1c9   : > { %vm509_vm7 = vcmp.lt.s32.totalorder %v507_v45, %v508_v46 }
 0x1ca   : > { %v510_v48 = vsel %vm509_vm7, %v507_v45, %v508_v46  ;;  %493 = vst.msk [vmem:[%s1025_s9 + $0x5] sm:$0x1] %vm267_vm13, %v492_v47 }
 0x1cb   : > { %v511_v49 = vrot.slane %v510_v48, 4 }
 0x1cd   : > { %vm512_vm8 = vcmp.lt.s32.totalorder %v510_v48, %v511_v49 }
 0x1ce   : > { %v513_v50 = vsel %vm512_vm8, %v510_v48, %v511_v49 }
 0x1cf   : > { %v514_v51 = vrot.slane %v513_v50, 2 }
 0x1d1   : > { %vm515_vm9 = vcmp.lt.s32.totalorder %v513_v50, %v514_v51 }
 0x1d2   : > { %v516_v52 = vsel %vm515_vm9, %v513_v50, %v514_v51 }
 0x1d3   : > { %v517_v53 = vrot.slane %v516_v52, 1 }
 0x1d5   : > { %vm518_vm10 = vcmp.lt.s32.totalorder %v516_v52, %v517_v53 }
 0x1d6   : > { %v519_v54 = vsel %vm518_vm10, %v516_v52, %v517_v53 }
 0x1d7   : > { %vm520_vm11 = vcmp.eq.s32.totalorder %v1007_v25, %v519_v54  ;;  %vm521_vm12 = vcmp.eq.s32.totalorder %v1010_v28, %v519_v54 }
 0x1d8   : > { %v692_v55 = vsel %vm520_vm11, 1.0, %v859_v39  ;;  %v693_v56 = vsel %vm521_vm12, 1.0, %v859_v39 }
 0x1d9   : > { %v526_v57 = vmul.f32 %v692_v55, %v996_v0  ;;  %v527_v58 = vmul.f32 %v693_v56, %v1001_v2  ;;  %vm539_vm14 = vcmp.gt.f32.partialorder %v692_v55, 0.0  ;;  %vm540_vm15 = vcmp.gt.f32.partialorder %v693_v56, 0.0 }
 0x1da   : > { %v541_v59 = vsel %vm539_vm14, -inf, %v496_v24  ;;  %v542_v60 = vsel %vm540_vm15, -inf, %v497_v26 }
 0x1db   : > { %v528_v61 = vsel %vm201_vm0, %v526_v57, 0.0  ;;  %v529_v62 = vsel %vm201_vm0, %v527_v58, 0.0  ;;  %v543_v63 = vmax.f32 %v541_v59, %v542_v60 }
 0x1dc   : > { %v530_v1 = vadd.f32 %v529_v62, %v528_v61 }
 0x1dd   : > { %v544_v3 = vrot.slane %v543_v63, 4 }
 0x1de   : > { %v531_v4 = vrot.slane %v530_v1, 4 }
 0x1df   : > { %v545_v5 = vmax.f32 %v543_v63, %v544_v3 }
 0x1e0   : > { %v532_v6 = vadd.f32 %v531_v4, %v530_v1 }
 0x1e1   : > { %v546_v7 = vrot.slane %v545_v5, 2 }
 0x1e2   : > { %v533_v8 = vrot.slane %v532_v6, 2 }
 0x1e3   : > { %v547_v9 = vmax.f32 %v545_v5, %v546_v7 }
 0x1e4   : > { %v534_v10 = vadd.f32 %v533_v8, %v532_v6 }
 0x1e5   : > { %v548_v11 = vrot.slane %v547_v9, 1 }
 0x1e6   : > { %v535_v12 = vrot.slane %v534_v10, 1 }
 0x1e7   : > { %v549_v13 = vmax.f32 %v547_v9, %v548_v11 }
 0x1e8   : > { %v536_v14 = vadd.f32 %v535_v12, %v534_v10 }
 0x1e9   : > { %vm550_vm1 = vcmp.eq.f32.partialorder %v541_v59, %v549_v13  ;;  %vm551_vm2 = vcmp.eq.f32.partialorder %v542_v60, %v549_v13 }
 0x1ea   : > { %v552_v15 = vsel %vm550_vm1, %v1007_v25, 16  ;;  %v553_v16 = vsel %vm551_vm2, %v1010_v28, 16  ;;  %v537_v17 = vmul.f32 %v536_v14, %v504_v43 }
 0x1eb   : > { %vm554_vm3 = vcmp.lt.s32.totalorder %v552_v15, %v553_v16 }
 0x1ec   : > { %v555_v18 = vsel %vm554_vm3, %v552_v15, %v553_v16  ;;  %538 = vst.msk [vmem:[%s1025_s9 + $0x6] sm:$0x1] %vm267_vm13, %v537_v17 }
 0x1ed   : > { %v556_v19 = vrot.slane %v555_v18, 4 }
 0x1ef   : > { %vm557_vm4 = vcmp.lt.s32.totalorder %v555_v18, %v556_v19 }
 0x1f0   : > { %v558_v20 = vsel %vm557_vm4, %v555_v18, %v556_v19 }
 0x1f1   : > { %v559_v21 = vrot.slane %v558_v20, 2 }
 0x1f3   : > { %vm560_vm5 = vcmp.lt.s32.totalorder %v558_v20, %v559_v21 }
 0x1f4   : > { %v561_v22 = vsel %vm560_vm5, %v558_v20, %v559_v21 }
 0x1f5   : > { %v562_v23 = vrot.slane %v561_v22, 1 }
 0x1f7   : > { %vm563_vm6 = vcmp.lt.s32.totalorder %v561_v22, %v562_v23 }
 0x1f8   : > { %v564_v24 = vsel %vm563_vm6, %v561_v22, %v562_v23 }
 0x1f9   : > { %vm565_vm7 = vcmp.eq.s32.totalorder %v1007_v25, %v564_v24  ;;  %vm566_vm8 = vcmp.eq.s32.totalorder %v1010_v28, %v564_v24 }
 0x1fa   : > { %v694_v26 = vsel %vm565_vm7, 1.0, %v859_v39  ;;  %v695_v27 = vsel %vm566_vm8, 1.0, %v859_v39 }
 0x1fb   : > { %v571_v29 = vmul.f32 %v694_v26, %v996_v0  ;;  %v572_v30 = vmul.f32 %v695_v27, %v1001_v2 }
 0x1fd   : > { %v573_v31 = vsel %vm201_vm0, %v571_v29, 0.0  ;;  %v574_v32 = vsel %vm201_vm0, %v572_v30, 0.0 }
 0x1fe   : > { %v575_v33 = vadd.f32 %v574_v32, %v573_v31 }
 0x200   : > { %v576_v34 = vrot.slane %v575_v33, 4 }
 0x202   : > { %v577_v25 = vadd.f32 %v576_v34, %v575_v33 }
 0x204   : > { %v578_v35 = vrot.slane %v577_v25, 2 }
 0x206   : > { %v579_v28 = vadd.f32 %v578_v35, %v577_v25 }
 0x208   : > { %v580_v36 = vrot.slane %v579_v28, 1 }
 0x20a   : > { %v581_v39 = vadd.f32 %v580_v36, %v579_v28 }
 0x20c   : > { %v582_v37 = vmul.f32 %v581_v39, %v549_v13 }
 0x20e   : > { %583 = vst.msk [vmem:[%s1025_s9 + $0x7] sm:$0x1] %vm267_vm13, %v582_v37 }
 0x20f   : > { %801 = shalt.err (!%p798_p2)
}
 0x210   : > { %s802_s30 = scalar_lea.hbm %s1114_s21, 128  ;;  %s806_s10 = scalar_lea.hbm %s1163_s3, 256 }
 0x211   : > { %p803_p4 = scmp.ne.s32.totalorder %s1114_s21, %s802_s30  ;;  %p807_p9 = scmp.lt.u32.totalorder %s1114_s21, %s1163_s3 }
 0x212   : > { %p808_p1 = scmp.lt.u32.totalorder %s806_s10, %s802_s30  ;;  %p810_p6 = scmp.lt.u32.totalorder %s802_s30, %s1114_s21 }
 0x213   : > { %p804_p5 = pnand %p803_p4, %p1170_p11 }
 0x214   : > { %p809_p3 = por %p808_p1, %p807_p9 }
 0x215   : > { %p805_p7 = pneg %p804_p5 }
 0x216   : > { %p811_p12 = por %p810_p6, %p809_p3 }
 0x218   : > { %p812_p13 = pnand %p811_p12, %p805_p7 }
 0x21a   : > { %815 = shalt.err (!%p812_p13)
}
 0x21b   : > { %703 = dma.vmem_to_hbm [thread:$0]  (%p1170_p11), %s1116_s13, 128, %s1114_s21, %s585_s23  }
 0x21c PF: > { %s610_s7 = sand.u32 1, %s842_s14   ;;  %p1171_p8 = scmp.ne.s32.totalorder %s1168_s26, 0 }
 0x21d   : > { %p1172_p10 = scmp.ge.s32.totalorder %s854_s17, 2  ;;  %s611_s24 = scalar_lea.sflag [#allocation5], %s610_s7 }
 0x21f   : > { %p710_p0 = pnand %p1172_p10, %p1171_p8 }
 0x221   : > { %837 = dma.done.wait (!%p710_p0), %s611_s24, 128  }
 0x222   : > { %839 = vsyncadd (!%p710_p0), %s611_s24, 4294967168  ;;  %p17_p2 = scmp.ge.s32.totalorder %s909_s19, 4   ;;  %s1173_s14 = smov %s846_s15 }
 0x223   : > { %s1174_s15 = smov %s850_s16  ;;  %s1175_s16 = smov %s921_s22 }
 0x224   : > { %s1176_s17 = smov %s909_s19  ;;  %19 = sbr.rel (!%p17_p2) target bundleno = 7 (0x7), region = 77 }
 0x22b   :  { %616 = vsyncpa [#allocation4], 1 }
 0x22c   :  { %618 = vsyncpa [#allocation4 + $0x1], 1 }
 0x22d   :  { %619 = vsyncpa [#allocation5], 1 }
 0x22e   :  { %621 = vsyncpa [#allocation5 + $0x1], 1 }

</bundles_post_ra>
